<compile_context>
chip_gen: v5e
topology: v5e:2x2
jax: 0.10.0
libtpu: 0.0.40
codegen_flags: <defaults>
</compile_context>

<pallas_src>
import functools
import math

import jax
import jax.numpy as jnp
from jax import lax
from jax.experimental import pallas as pl
from jax.experimental.pallas import tpu as pltpu


def _budgets():
    """Per-generation (block_bytes, vmem_limit_bytes)."""
    try:
        vmem = int(pltpu.get_tpu_info().vmem_capacity_bytes)
    except Exception:
        vmem = 64 << 20
    if vmem >= (96 << 20):            # v5e / v6e: 128 MiB VMEM per core
        return 4 << 20, 64 << 20
    return 2 << 20, 48 << 20          # v7x-class: 64 MiB VMEM per TensorCore


# ----------------------------------------------------------------------------
# per-element loss formulas (computed in f32 inside the kernels)
# ----------------------------------------------------------------------------
def _bce_logits(x, t):
    # stable binary_cross_entropy_with_logits
    return jnp.maximum(x, 0.0) - x * t + jnp.log(1.0 + jnp.exp(-jnp.abs(x)))


def _bce(p, t):
    # binary_cross_entropy on probabilities, log clamped at -100 like PyTorch
    log_p = jnp.maximum(jnp.log(p), -100.0)
    log_1mp = jnp.maximum(jnp.log(1.0 - p), -100.0)
    return -(t * log_p + (1.0 - t) * log_1mp)


# ----------------------------------------------------------------------------
# elementwise (bce / bce_use_sigmoid) kernels
# ----------------------------------------------------------------------------
def _ew_none_kernel(p_ref, t_ref, o_ref, *, loss_fn, scale):
    x = p_ref[...].astype(jnp.float32)
    t = t_ref[...].astype(jnp.float32)
    o_ref[...] = (loss_fn(x, t) * scale).astype(o_ref.dtype)


def _ew_psum_kernel(p_ref, t_ref, o_ref, *, loss_fn, n_valid, needs_mask):
    # Each block writes its own partial sum -> output block (1, 1, 1).
    x = p_ref[...].astype(jnp.float32)
    t = t_ref[...].astype(jnp.float32)
    loss = loss_fn(x, t)
    if needs_mask:
        i = pl.program_id(0)
        last = pl.num_programs(0) - 1

        @pl.when(i != last)
        def _():
            o_ref[...] = jnp.sum(loss).reshape(1, 1, 1)

        @pl.when(i == last)
        def _():
            tm, c = loss.shape
            r_io = lax.broadcasted_iota(jnp.int32, (tm, c), 0)
            c_io = lax.broadcasted_iota(jnp.int32, (tm, c), 1)
            lin = (i * tm + r_io) * c + c_io
            o_ref[...] = jnp.sum(
                jnp.where(lin < n_valid, loss, 0.0)).reshape(1, 1, 1)
    else:
        o_ref[...] = jnp.sum(loss).reshape(1, 1, 1)


# ----------------------------------------------------------------------------
# 'ce' kernels: (N, C) logits — classes on the lanes
# ----------------------------------------------------------------------------
def _ce_row_loss(x, tgt):
    # x: (tm, C) f32 logits; tgt: (tm, 1) int32
    m = jnp.max(x, axis=-1, keepdims=True)
    lse = m + jnp.log(jnp.sum(jnp.exp(x - m), axis=-1, keepdims=True))
    cols = lax.broadcasted_iota(jnp.int32, x.shape, 1)
    picked = jnp.sum(jnp.where(cols == tgt, x, 0.0), axis=-1, keepdims=True)
    return lse - picked  # (tm, 1)


def _ce_none_kernel(p_ref, t_ref, o_ref, *, scale):
    x = p_ref[...].astype(jnp.float32)
    o_ref[...] = (_ce_row_loss(x, t_ref[...]) * scale).astype(o_ref.dtype)


def _ce_psum_kernel(p_ref, t_ref, o_ref, *, n_rows, needs_mask):
    x = p_ref[...].astype(jnp.float32)
    loss = _ce_row_loss(x, t_ref[...])  # (tm, 1)
    if needs_mask:
        i = pl.program_id(0)
        last = pl.num_programs(0) - 1

        @pl.when(i != last)
        def _():
            o_ref[...] = jnp.sum(loss).reshape(1, 1, 1)

        @pl.when(i == last)
        def _():
            tm = loss.shape[0]
            r_io = lax.broadcasted_iota(jnp.int32, (tm, 1), 0)
            o_ref[...] = jnp.sum(
                jnp.where(i * tm + r_io < n_rows, loss, 0.0)).reshape(1, 1, 1)
    else:
        o_ref[...] = jnp.sum(loss).reshape(1, 1, 1)


# ----------------------------------------------------------------------------
# 'ce' kernels: spatial (N, C, HW) logits tiled directly — classes on the
# sublanes, spatial positions on the lanes (no moveaxis / transpose in HBM).
# ----------------------------------------------------------------------------
def _ce_sp_loss(x, tgt):
    # x: (1, C, thw) f32 logits; tgt: (1, 1, thw) int32
    m = jnp.max(x, axis=1, keepdims=True)
    lse = m + jnp.log(jnp.sum(jnp.exp(x - m), axis=1, keepdims=True))
    cls = lax.broadcasted_iota(jnp.int32, x.shape, 1)
    picked = jnp.sum(jnp.where(cls == tgt, x, 0.0), axis=1, keepdims=True)
    return lse - picked  # (1, 1, thw)


def _ce_sp_none_kernel(p_ref, t_ref, o_ref, *, scale):
    x = p_ref[...].astype(jnp.float32)
    o_ref[...] = (_ce_sp_loss(x, t_ref[...]) * scale).astype(o_ref.dtype)


def _ce_sp_psum_kernel(p_ref, t_ref, o_ref, *, hw, needs_mask):
    x = p_ref[...].astype(jnp.float32)
    loss = _ce_sp_loss(x, t_ref[...])  # (1, 1, thw)
    if needs_mask:
        j = pl.program_id(1)
        last = pl.num_programs(1) - 1

        @pl.when(j != last)
        def _():
            o_ref[...] = jnp.sum(loss).reshape(1, 1, 1)

        @pl.when(j == last)
        def _():
            thw = loss.shape[-1]
            col = lax.broadcasted_iota(jnp.int32, loss.shape, 2)
            o_ref[...] = jnp.sum(
                jnp.where(j * thw + col < hw, loss, 0.0)).reshape(1, 1, 1)
    else:
        o_ref[...] = jnp.sum(loss).reshape(1, 1, 1)


# ----------------------------------------------------------------------------
# wrappers
# ----------------------------------------------------------------------------
def _ew_forward(pred, target, loss_fn, pad_val, reduction, loss_weight,
                avg_factor):
    orig_shape = pred.shape
    n = math.prod(orig_shape)
    block_bytes, vmem_limit = _budgets()

    # Lane-dense layout (rows, c): widest lane count in {512,256,128} dividing
    # numel -> a free reshape, no pad, no output slice (the common case).
    c = None
    for cand in (512, 256, 128):
        if n % cand == 0:
            c = cand
            break
    padded = c is None
    if padded:
        # TODO(synk): rare path (numel % 128 != 0) still pays one pad copy and
        # one output slice; the sub-512-element tail is masked in-kernel.
        c = 512
        n_rows = -(-n // c)
    else:
        n_rows = n // c

    tm = (block_bytes // (c * 4)) // 8 * 8
    tm = max(8, min(tm, 8192))
    if tm >= n_rows:
        tm = n_rows           # block == full row extent -> always a legal tile
    grid_rows = pl.cdiv(n_rows, tm)

    p2 = pred.reshape(-1)
    t2 = target.reshape(-1)
    if padded:
        extra = n_rows * c - n
        p2 = jnp.pad(p2, (0, extra), constant_values=pad_val)
        t2 = jnp.pad(t2, (0, extra), constant_values=pad_val)
    p2 = p2.reshape(n_rows, c)
    t2 = t2.reshape(n_rows, c)

    in_specs = [pl.BlockSpec((tm, c), lambda i: (i, 0)),
                pl.BlockSpec((tm, c), lambda i: (i, 0))]

    if reduction in ('mean', 'sum'):
        needs_mask = padded or (n_rows % tm != 0)
        kern = functools.partial(_ew_psum_kernel, loss_fn=loss_fn,
                                 n_valid=n, needs_mask=needs_mask)
        partials = pl.pallas_call(
            kern,
            out_shape=jax.ShapeDtypeStruct((grid_rows, 1, 1), jnp.float32),
            grid_spec=pltpu.PrefetchScalarGridSpec(
                num_scalar_prefetch=0,
                grid=(grid_rows,),
                in_specs=in_specs,
                out_specs=pl.BlockSpec((1, 1, 1), lambda i: (i, 0, 0)),
            ),
            compiler_params=pltpu.CompilerParams(
                dimension_semantics=('parallel',),
                vmem_limit_bytes=vmem_limit),
        )(p2, t2)
        denom = float(n) if reduction == 'mean' else 1.0
        s = jnp.sum(partials) * (loss_weight / (avg_factor * denom))
        return s.astype(pred.dtype)

    # reduction in (None, 'none') — scale fused into the kernel (f32, pre-cast)
    scale = loss_weight / avg_factor
    kern = functools.partial(_ew_none_kernel, loss_fn=loss_fn, scale=scale)
    out = pl.pallas_call(
        kern,
        out_shape=jax.ShapeDtypeStruct((n_rows, c), pred.dtype),
        grid_spec=pltpu.PrefetchScalarGridSpec(
            num_scalar_prefetch=0,
            grid=(grid_rows,),
            in_specs=in_specs,
            out_specs=pl.BlockSpec((tm, c), lambda i: (i, 0)),
        ),
        compiler_params=pltpu.CompilerParams(
            dimension_semantics=('parallel',),
            vmem_limit_bytes=vmem_limit),
    )(p2, t2)
    if padded:
        return out.reshape(-1)[:n].reshape(orig_shape)
    return out.reshape(orig_shape)


def _ce_forward(pred, target, reduction, loss_weight, avg_factor):
    block_bytes, vmem_limit = _budgets()
    n_cls = pred.shape[1]
    n = pred.shape[0]

    if pred.ndim == 2:
        # (N, C) logits, (N,) int targets — no class padding, no transpose.
        t2 = target.reshape(n, 1).astype(jnp.int32)
        tm = (block_bytes // (n_cls * 4)) // 8 * 8
        tm = max(8, min(tm, 8192))
        if tm >= n:
            tm = n
        grid_rows = pl.cdiv(n, tm)
        in_specs = [pl.BlockSpec((tm, n_cls), lambda i: (i, 0)),
                    pl.BlockSpec((tm, 1), lambda i: (i, 0))]

        if reduction in ('mean', 'sum'):
            needs_mask = (n % tm != 0)
            kern = functools.partial(_ce_psum_kernel, n_rows=n,
                                     needs_mask=needs_mask)
            partials = pl.pallas_call(
                kern,
                out_shape=jax.ShapeDtypeStruct((grid_rows, 1, 1), jnp.float32),
                grid_spec=pltpu.PrefetchScalarGridSpec(
                    num_scalar_prefetch=0,
                    grid=(grid_rows,),
                    in_specs=in_specs,
                    out_specs=pl.BlockSpec((1, 1, 1), lambda i: (i, 0, 0)),
                ),
                compiler_params=pltpu.CompilerParams(
                    dimension_semantics=('parallel',),
                    vmem_limit_bytes=vmem_limit),
            )(pred, t2)
            denom = float(n) if reduction == 'mean' else 1.0
            s = jnp.sum(partials) * (loss_weight / (avg_factor * denom))
            return s.astype(pred.dtype)

        # TODO(synk): per-row losses are stored as (tm, 1) blocks; a lane-dense
        # transposed store would need a (tm,1)->(1,tm) in-kernel relayout that
        # Mosaic does not reliably lower, so it is left out.
        scale = loss_weight / avg_factor
        kern = functools.partial(_ce_none_kernel, scale=scale)
        out = pl.pallas_call(
            kern,
            out_shape=jax.ShapeDtypeStruct((n, 1), pred.dtype),
            grid_spec=pltpu.PrefetchScalarGridSpec(
                num_scalar_prefetch=0,
                grid=(grid_rows,),
                in_specs=in_specs,
                out_specs=pl.BlockSpec((tm, 1), lambda i: (i, 0)),
            ),
            compiler_params=pltpu.CompilerParams(
                dimension_semantics=('parallel',),
                vmem_limit_bytes=vmem_limit),
        )(pred, t2)
        return out.reshape(n)

    # Spatial case: pred (N, C, *spatial), target (N, *spatial).  Tile NCHW
    # directly: classes on sublanes, spatial on lanes (free reshapes only).
    spatial = pred.shape[2:]
    hw = math.prod(spatial)
    x3 = pred.reshape(n, n_cls, hw)
    t3 = target.reshape(n, 1, hw).astype(jnp.int32)

    max_thw = max(128, (block_bytes // (n_cls * 4)) // 128 * 128)
    thw = hw if hw <= max_thw else max_thw
    nhw = int(pl.cdiv(hw, thw))
    grid = (n, nhw)

    in_specs = [pl.BlockSpec((1, n_cls, thw), lambda i, j: (i, 0, j)),
                pl.BlockSpec((1, 1, thw), lambda i, j: (i, 0, j))]

    if reduction in ('mean', 'sum'):
        needs_mask = (hw % thw != 0)
        kern = functools.partial(_ce_sp_psum_kernel, hw=hw,
                                 needs_mask=needs_mask)
        partials = pl.pallas_call(
            kern,
            out_shape=jax.ShapeDtypeStruct((n * nhw, 1, 1), jnp.float32),
            grid_spec=pltpu.PrefetchScalarGridSpec(
                num_scalar_prefetch=0,
                grid=grid,
                in_specs=in_specs,
                out_specs=pl.BlockSpec((1, 1, 1),
                                       lambda i, j: (i * nhw + j, 0, 0)),
            ),
            compiler_params=pltpu.CompilerParams(
                dimension_semantics=('parallel', 'parallel'),
                vmem_limit_bytes=vmem_limit),
        )(x3, t3)
        denom = float(n * hw) if reduction == 'mean' else 1.0
        s = jnp.sum(partials) * (loss_weight / (avg_factor * denom))
        return s.astype(pred.dtype)

    scale = loss_weight / avg_factor
    kern = functools.partial(_ce_sp_none_kernel, scale=scale)
    out = pl.pallas_call(
        kern,
        out_shape=jax.ShapeDtypeStruct((n, 1, hw), pred.dtype),
        grid_spec=pltpu.PrefetchScalarGridSpec(
            num_scalar_prefetch=0,
            grid=grid,
            in_specs=in_specs,
            out_specs=pl.BlockSpec((1, 1, thw), lambda i, j: (i, 0, j)),
        ),
        compiler_params=pltpu.CompilerParams(
            dimension_semantics=('parallel', 'parallel'),
            vmem_limit_bytes=vmem_limit),
    )(x3, t3)
    return out.reshape((n,) + spatial)


def cross_entropy_loss(pred, target, *, loss_weight=1.0, reduction='none',
                       loss_type='bce_use_sigmoid', avg_factor=1.0):
    """Forward pass of the YOLOX CrossEntropyLoss module."""
    assert reduction in [None, 'none', 'mean', 'sum']
    assert loss_type in ['ce', 'bce', 'bce_use_sigmoid']
    assert pred.shape[0] == target.shape[0], \
        f'expect {pred.shape} == {target.shape}'
    if pred.shape[0] == 0:
        # matches `pred.sum() * 0.0` in the reference module
        return jnp.zeros((), pred.dtype)

    # NOTE: baked in as compile-time constants (distinct values recompile).
    loss_weight = float(loss_weight)
    avg_factor = float(avg_factor)

    if loss_type == 'ce':
        return _ce_forward(pred, target, reduction, loss_weight, avg_factor)
    if loss_type == 'bce_use_sigmoid':
        return _ew_forward(pred, target, _bce_logits, 0.0, reduction,
                           loss_weight, avg_factor)
    # 'bce' on probabilities: pad with 0.5 so any padded lanes stay finite
    return _ew_forward(pred, target, _bce, 0.5, reduction,
                       loss_weight, avg_factor)


# ----------------------------------------------------------------------------
# pure-JAX reference
# ----------------------------------------------------------------------------
def _ref_loss(pred, target, loss_weight=1.0, reduction='none',
              loss_type='bce_use_sigmoid', avg_factor=1.0):
    if loss_type == 'bce_use_sigmoid':
        x = pred.astype(jnp.float32)
        t = target.astype(jnp.float32)
        loss = jnp.maximum(x, 0.0) - x * t + jnp.log1p(jnp.exp(-jnp.abs(x)))
    elif loss_type == 'bce':
        p = pred.astype(jnp.float32)
        t = target.astype(jnp.float32)
        loss = -(t * jnp.maximum(jnp.log(p), -100.0)
                 + (1.0 - t) * jnp.maximum(jnp.log(1.0 - p), -100.0))
    else:  # 'ce'
        x = jnp.moveaxis(pred, 1, -1).astype(jnp.float32)
        lse = jax.scipy.special.logsumexp(x, axis=-1)
        picked = jnp.take_along_axis(
            x, target[..., None].astype(jnp.int32), axis=-1)[..., 0]
        loss = lse - picked
    if reduction == 'mean':
        loss = loss.mean()
    elif reduction == 'sum':
        loss = loss.sum()
    return loss_weight * loss / avg_factor


if __name__ == "__main__":
    key = jax.random.PRNGKey(0)
    k1, k2, k3, k4, k5, k6 = jax.random.split(key, 6)

    # --- bce_use_sigmoid (module defaults), objectness-style map (2, 4, 16, 16)
    logits = jax.random.normal(k1, (2, 4, 16, 16), dtype=jnp.float32)
    soft_t = jax.random.uniform(k2, (2, 4, 16, 16), dtype=jnp.float32)

    out_none = jax.block_until_ready(
        cross_entropy_loss(logits, soft_t, loss_weight=1.0, reduction='none',
                           loss_type='bce_use_sigmoid'))
    assert out_none.shape == logits.shape
    assert jnp.allclose(out_none, _ref_loss(logits, soft_t),
                        rtol=1e-5, atol=1e-5)

    out_mean = jax.block_until_ready(
        cross_entropy_loss(logits, soft_t, loss_weight=2.0, reduction='mean',
                           loss_type='bce_use_sigmoid', avg_factor=3.0))
    assert jnp.allclose(out_mean,
                        _ref_loss(logits, soft_t, 2.0, 'mean',
                                  'bce_use_sigmoid', 3.0),
                        rtol=1e-5, atol=1e-5)

    # --- bce on probabilities, reduction='sum'
    probs = jax.nn.sigmoid(jax.random.normal(k3, (2, 4, 16, 16),
                                             dtype=jnp.float32))
    out_sum = jax.block_until_ready(
        cross_entropy_loss(probs, soft_t, loss_weight=1.5, reduction='sum',
                           loss_type='bce', avg_factor=2.0))
    assert jnp.allclose(out_sum,
                        _ref_loss(probs, soft_t, 1.5, 'sum', 'bce', 2.0),
                        rtol=1e-4, atol=1e-4)

    # --- ce with class logits (8, 10) and integer targets
    ce_logits = jax.random.normal(k4, (8, 10), dtype=jnp.float32)
    ce_tgt = jax.random.randint(k5, (8,), 0, 10)
    out_ce = jax.block_until_ready(
        cross_entropy_loss(ce_logits, ce_tgt, loss_weight=1.0,
                           reduction='none', loss_type='ce'))
    assert out_ce.shape == (8,)
    assert jnp.allclose(out_ce, _ref_loss(ce_logits, ce_tgt, loss_type='ce'),
                        rtol=1e-5, atol=1e-5)

    # --- ce with spatial dims (2, 5, 4, 4), reduction='mean'
    ce_logits2 = jax.random.normal(k6, (2, 5, 4, 4), dtype=jnp.float32)
    ce_tgt2 = jax.random.randint(k2, (2, 4, 4), 0, 5)
    out_ce2 = jax.block_until_ready(
        cross_entropy_loss(ce_logits2, ce_tgt2, loss_weight=2.0,
                           reduction='mean', loss_type='ce', avg_factor=4.0))
    assert jnp.allclose(out_ce2,
                        _ref_loss(ce_logits2, ce_tgt2, 2.0, 'mean', 'ce', 4.0),
                        rtol=1e-5, atol=1e-5)

    print("KERNEL_OK")
</pallas_src>

<mosaic_0001>
module attributes {stable_mosaic.version = 11 : i64} {
  func.func @_ew_none_kernel(%arg0: i32, %arg1: memref<4x512xf32, #tpu.memory_space<vmem>>, %arg2: memref<4x512xf32, #tpu.memory_space<vmem>>, %arg3: memref<4x512xf32, #tpu.memory_space<vmem>>) attributes {dimension_semantics = [#tpu.dimension_semantics<parallel>], iteration_bounds = array<i64: 1>, scalar_prefetch = 0 : i64, scratch_operands = 0 : i64, tpu.core_type = #tpu.core_type<tc>, window_params = [{transform_indices = @transform_0, window_bounds = array<i64: 4, 512>}, {transform_indices = @transform_1, window_bounds = array<i64: 4, 512>}, {transform_indices = @transform_2, window_bounds = array<i64: 4, 512>}]} {
    %c0 = arith.constant 0 : index
    %c0_0 = arith.constant 0 : index
    %0 = vector.load %arg1[%c0, %c0_0] : memref<4x512xf32, #tpu.memory_space<vmem>>, vector<4x512xf32>
    %c0_1 = arith.constant 0 : index
    %c0_2 = arith.constant 0 : index
    %1 = vector.load %arg2[%c0_1, %c0_2] : memref<4x512xf32, #tpu.memory_space<vmem>>, vector<4x512xf32>
    %cst = arith.constant 0.000000e+00 : f32
    %2 = vector.broadcast %cst : f32 to vector<4x512xf32>
    %3 = arith.maximumf %0, %2 : vector<4x512xf32>
    %4 = arith.mulf %0, %1 : vector<4x512xf32>
    %5 = arith.subf %3, %4 : vector<4x512xf32>
    %6 = math.absf %0 : vector<4x512xf32>
    %cst_3 = arith.constant 0.000000e+00 : f32
    %7 = vector.broadcast %cst_3 : f32 to vector<4x512xf32>
    %8 = arith.subf %7, %6 : vector<4x512xf32>
    %9 = math.exp %8 : vector<4x512xf32>
    %cst_4 = arith.constant 1.000000e+00 : f32
    %10 = vector.broadcast %cst_4 : f32 to vector<4x512xf32>
    %11 = arith.addf %10, %9 : vector<4x512xf32>
    %12 = math.log %11 : vector<4x512xf32>
    %13 = arith.addf %5, %12 : vector<4x512xf32>
    %cst_5 = arith.constant 1.000000e+00 : f32
    %14 = vector.broadcast %cst_5 : f32 to vector<4x512xf32>
    %15 = arith.mulf %13, %14 : vector<4x512xf32>
    %c0_6 = arith.constant 0 : index
    %c0_7 = arith.constant 0 : index
    %16 = vector.load %arg3[%c0_6, %c0_7] : memref<4x512xf32, #tpu.memory_space<vmem>>, vector<4x512xf32>
    tpu.vector_store %arg3[%c0_6, %c0_7], %15 {strides = array<i32>} : memref<4x512xf32, #tpu.memory_space<vmem>>, vector<4x512xf32>,
    return
  }
  func.func @transform_0(%arg0: i32) -> (i32, i32) {
    %c0_i32 = arith.constant 0 : i32
    %c0_i32_0 = arith.constant 0 : i32
    return %arg0, %c0_i32 : i32, i32
  }
  func.func @transform_1(%arg0: i32) -> (i32, i32) {
    %c0_i32 = arith.constant 0 : i32
    %c0_i32_0 = arith.constant 0 : i32
    return %arg0, %c0_i32 : i32, i32
  }
  func.func @transform_2(%arg0: i32) -> (i32, i32) {
    %c0_i32 = arith.constant 0 : i32
    %c0_i32_0 = arith.constant 0 : i32
    return %arg0, %c0_i32 : i32, i32
  }
}

</mosaic_0001>

<bundles_post_ra>
// kernel: tpu_custom_call.1
= control target key start
LH: loop header
LB: loop body
LE: loop exit
PB: predicated region body
PF: predicated region fallthrough
CT: control target
= control target key end

     0   :  { %7 = vsyncpa [#allocation3], 0  ;;  %s202_s0 = inlined_call_operand.hbm [shape: f32[4,512], index: 0, kind: input, shape index: {}]   ;;  %s203_s1 = inlined_call_operand.hbm [shape: f32[4,512], index: 1, kind: input, shape index: {}]   ;;  %s204_s2 = inlined_call_operand.hbm [shape: f32[4,512], index: 2, kind: output, shape index: {}]  }
   0x1   :  { %8 = vsyncpa [#allocation6], 0 }
   0x2   :  { %9 = vsyncpa [#allocation4], 0  ;;  %s15_s11 = sshll.u32 %s202_s0, 4  ;;  %s175_s12 = smov [#allocation2]   ;;  %s16_s11 = int_to_ptr.hbm [resolvable:$true] %s15_s11 }
   0x3   :  { %s17_s13 = sshll.u32 %s175_s12, 4  ;;  %s26_s16 = sshll.u32 %s203_s1, 4  ;;  %s18_s13 = int_to_ptr.vmem [resolvable:$true] %s17_s13  ;;  %s27_s16 = int_to_ptr.hbm [resolvable:$true] %s26_s16 }
   0x4   :  { %20 = dma.hbm_to_vmem [thread:$0]  %s16_s11, 256, %s18_s13, [#allocation3]  }
   0x5   :  { %s176_s17 = smov [#allocation5]  }
   0x6   :  { %s28_s18 = sshll.u32 %s176_s17, 4  ;;  %s29_s18 = int_to_ptr.vmem [resolvable:$true] %s28_s18 }
   0x7   :  { %31 = dma.hbm_to_vmem [thread:$0]  %s27_s16, 256, %s29_s18, [#allocation6]  }
   0x8   :  { %169 = dma.done.wait [#allocation3], 256  }
   0x9   :  { %170 = vsyncadd [#allocation3], 4294967040 }
   0xa   :  { %171 = dma.done.wait [#allocation6], 256  }
   0xb   :  { %172 = vsyncadd [#allocation6], 4294967040  ;;  %v40_v0 = vld [vmem:[#allocation2] sm:$0xff]  ;;  %v41_v1 = vld [vmem:[#allocation2 + $0x8] sm:$0xff]  ;;  %s177_s0 = smov [#allocation7]   ;;  %s75_s21 = sshll.u32 %s204_s2, 4  ;;  %s76_s21 = int_to_ptr.hbm [resolvable:$true] %s75_s21 }
   0xc   :  { %v50_v2 = vand.u32 2147483647, %v40_v0  ;;  %v51_v3 = vand.u32 2147483647, %v41_v1  ;;  %v42_v10 = vld [vmem:[#allocation5] sm:$0xff]  ;;  %v43_v12 = vld [vmem:[#allocation5 + $0x8] sm:$0xff] }
   0xd   :  { %v44_v14 = vmax.f32 %v40_v0, 0.0  ;;  %v46_v15 = vmul.f32 %v42_v10, %v40_v0  ;;  %v45_v16 = vmax.f32 %v41_v1, 0.0  ;;  %v47_v17 = vmul.f32 %v43_v12, %v41_v1  ;;  %s73_s1 = sshll.u32 %s177_s0, 4  ;;  %s74_s1 = int_to_ptr.vmem [resolvable:$true] %s73_s1 }
   0xe   :  { %v52_v4 = vsub.f32 0.0, %v50_v2  ;;  %v53_v5 = vsub.f32 0.0, %v51_v3 }
   0xf   :  { %v48_v18 = vsub.f32 %v44_v14, %v46_v15  ;;  %v49_v20 = vsub.f32 %v45_v16, %v47_v17 }
  0x10   :  { %v54_v6 = vmul.f32 1.442695, %v52_v4  ;;  %v56_v7 = vmul.f32 1.442695, %v53_v5 }
  0x12   :  { %89 = vpow2.f32 %v54_v6 }
  0x13   :  { %91 = vpow2.f32 %v56_v7 }
  0x18   :  { %v90_v8 = vpop.eup %89 }
  0x19   :  { %v92_v9 = vpop.eup %91  ;;  %v58_v11 = vadd.f32 1.0, %v90_v8 }
  0x1a   :  { %v59_v13 = vadd.f32 1.0, %v92_v9 }
  0x1b   :  { %93 = vlog2.f32 %v58_v11 }
  0x1c   :  { %95 = vlog2.f32 %v59_v13 }
  0x21   :  { %v94_v19 = vpop.eup %93 }
  0x22   :  { %v96_v21 = vpop.eup %95  ;;  %v61_v22 = vmul.f32 0.6931472, %v94_v19 }
  0x23   :  { %v63_v23 = vmul.f32 0.6931472, %v96_v21 }
  0x24   :  { %v64_v24 = vadd.f32 %v61_v22, %v48_v18 }
  0x25   :  { %v65_v25 = vadd.f32 %v63_v23, %v49_v20 }
  0x26   :  { %66 = vst [vmem:[#allocation7] sm:$0xff] %v64_v24 }
  0x27   :  { %67 = vst [vmem:[#allocation7 + $0x8] sm:$0xff] %v65_v25 }
  0x28   :  { %78 = dma.vmem_to_hbm [thread:$0]  %s74_s1, 256, %s76_s21, [#allocation4]  }
  0x29   :  { %173 = dma.done.wait [#allocation4], 256  }
  0x2a   :  { %174 = vsyncadd [#allocation4], 4294967040 }
  0x2b   :  { %83 = vsyncpa [#allocation3], 1 }
  0x2c   :  { %84 = vsyncpa [#allocation6], 1 }
  0x2d   :  { %85 = vsyncpa [#allocation4], 1 }

</bundles_post_ra>
